<compile_context>
chip_gen: v7x
topology: tpu7x:2x2x1
jax: 0.10.0
libtpu: 0.0.40
codegen_flags: <defaults>
</compile_context>

<pallas_src>
import functools

import jax
import jax.numpy as jnp
from jax.experimental import pallas as pl
from jax.experimental.pallas import tpu as pltpu


def _round_up(x: int, m: int) -> int:
    return (x + m - 1) // m * m


def _fused_table(emb_table, lin_w, lin_b, pack: int, width: int):
    """Block-diagonal stack of `pack` copies of (emb @ W^T + b), (width, width)."""
    V = emb_table.shape[0]
    fused = jnp.einsum("ve,we->vw", emb_table, lin_w,
                       precision=jax.lax.Precision.HIGHEST) + lin_b[None, :]
    table = jnp.zeros((width, width), jnp.float32)
    for p in range(pack):
        table = table.at[p * V:(p + 1) * V, p * V:(p + 1) * V].set(fused)
    return table


def _gather_kernel(tok_ref, table_ref, out_ref, *, pack: int, vocab: int,
                   chunks: int):
    # tok_ref   : (pack, 128, chunks) int32 -- lane column g holds the 128
    #             tokens (one per sublane) feeding output rows [g*128,(g+1)*128)
    # table_ref : (width, width) f32 block-diagonal fused table, VMEM-resident
    # out_ref   : (chunks*128, width) f32 logits tile
    width = table_ref.shape[1]
    table = table_ref[...]
    col_id = jax.lax.broadcasted_iota(jnp.int32, (128, width), 1)
    for g in range(chunks):
        # Combined one-hot: lane r lights up iff r == token_p + p*vocab for the
        # pack slot p that owns output lanes [p*vocab, (p+1)*vocab).
        match = tok_ref[0, :, g:g + 1] == col_id
        for p in range(1, pack):
            match = match | ((tok_ref[p, :, g:g + 1] + p * vocab) == col_id)
        onehot = match.astype(jnp.float32)
        # HIGHEST keeps the gather exact in f32.  v5e note: if the multi-pass
        # f32 matmul ever surfaces over the output DMA there, a 2-term bf16
        # split of the table halves the MXU passes at ~1e-7 relative error.
        out_ref[g * 128:(g + 1) * 128, :] = jnp.dot(
            onehot, table,
            precision=jax.lax.Precision.HIGHEST,
            preferred_element_type=jnp.float32)


def char_level_model_forward(tokens, emb_table, lin_w, lin_b, *,
                             tile_rows: int = 4096,
                             force_pallas: bool = False):
    """CharacterLevelModel.forward: tokens (B,S) int -> logits (B,S,V) f32."""
    B, S_seq = tokens.shape
    V, _E = emb_table.shape
    N = B * S_seq

    # Pack P tokens per 128-lane output row when the vocab divides 128.
    pack = 128 // V if (128 % V == 0 and 16 <= V <= 128) else 1
    width = _round_up(pack * V, 128)           # kernel row width == table size
    rows = -(-N // pack)                       # output rows needed

    tok = tokens.reshape(-1).astype(jnp.int32)

    # Small-N fast path: a 1-2 step grid pays full pallas_call fixed cost
    # (table load, DMA setup) for microseconds of work; XLA gather is as fast
    # and keeps the v7x megacore free.
    if not force_pallas and -(-rows // max(tile_rows, 128)) <= 2:
        fused = jnp.einsum("ve,we->vw", emb_table, lin_w,
                           precision=jax.lax.Precision.HIGHEST) + lin_b[None, :]
        return jnp.take(fused, tok, axis=0).reshape(B, S_seq, V)

    # Resident-table VMEM audit: f32 table is width^2*4 bytes per buffer.
    if 2 * width * width * 4 > 16 * 1024 * 1024:
        # TODO(synk): for vocab >~ 1K switch the resident table to bf16 or
        # tile it over a reduction grid axis instead of keeping it resident.
        raise ValueError("fused table too large to keep VMEM-resident; tile "
                         "it over a reduction axis for large vocabularies")

    # Tile sizing: big output tiles (default 4096 rows = 2 MiB f32) amortise
    # per-grid-step overhead; shrink for medium inputs so there are >= 2 grid
    # steps for the v7x megacore, floor at one 128-row chunk.
    tile_rows_eff = max(128, _round_up(min(tile_rows, -(-rows // 2)), 128))
    chunks = tile_rows_eff // 128
    rows_pad = _round_up(max(rows, tile_rows_eff), tile_rows_eff)
    num_tiles = rows_pad // tile_rows_eff

    # Token relayout (tiny: 4 B/token, done once by XLA) into
    # (num_tiles*pack, 128, chunks): lane-dense blocks whose lane columns are
    # the per-chunk sublane token vectors the kernel needs -> contiguous DMAs
    # and no in-kernel transpose.  Padded slots hold id 0 and gather fused[0];
    # those rows are sliced off below (keep that invariant).
    tok = jnp.pad(tok, (0, rows_pad * pack - N))
    tok3 = (tok.reshape(num_tiles, chunks, 128, pack)
               .transpose(0, 3, 2, 1)
               .reshape(num_tiles * pack, 128, chunks))

    # NOTE: the fused table is recomputed per call (V^2*E flops) -- jit/cache
    # the whole forward if the vocab grows or this is called every step.
    table = _fused_table(emb_table, lin_w, lin_b, pack, width)

    kernel = functools.partial(_gather_kernel, pack=pack, vocab=V,
                               chunks=chunks)

    out = pl.pallas_call(
        kernel,
        out_shape=jax.ShapeDtypeStruct((rows_pad, width), jnp.float32),
        grid_spec=pltpu.PrefetchScalarGridSpec(
            num_scalar_prefetch=0,
            grid=(num_tiles,),
            in_specs=[
                # Per-tile token block: a handful of contiguous DMA rows.
                pl.BlockSpec((pack, 128, chunks), lambda i: (i, 0, 0)),
                # Constant index_map -> fused table stays VMEM-resident.
                pl.BlockSpec((width, width), lambda i: (0, 0)),
            ],
            out_specs=pl.BlockSpec((tile_rows_eff, width), lambda i: (i, 0)),
        ),
        compiler_params=pltpu.CompilerParams(
            dimension_semantics=("parallel",),
            vmem_limit_bytes=32 * 1024 * 1024,
        ),
    )(tok3, table)

    # (rows_pad, width) -> (rows_pad*pack, V) is a contiguous (free) reshape
    # when pack*V == width (e.g. V=64); only trailing padded rows are sliced.
    # TODO(synk): for vocabs not dividing 128, the [:, :pack*V] column slice
    # still costs one extra HBM pass.
    logits = out[:, :pack * V].reshape(rows_pad * pack, V)[:N]
    return logits.reshape(B, S_seq, V)


def reference_forward(tokens, emb_table, lin_w, lin_b):
    embedded = emb_table[tokens]                                   # (B, S, E)
    return jnp.einsum("bse,ve->bsv", embedded, lin_w,
                      precision=jax.lax.Precision.HIGHEST) + lin_b


if __name__ == "__main__":
    key = jax.random.PRNGKey(0)
    k1, k2, k3, k4, k5 = jax.random.split(key, 5)

    vocabulary_size = 64
    embedding_size = 32

    emb_table = jax.random.normal(k2, (vocabulary_size, embedding_size),
                                  dtype=jnp.float32) * 0.02
    lin_w = jax.random.normal(k3, (vocabulary_size, embedding_size),
                              dtype=jnp.float32) * 0.02
    lin_b = jax.random.normal(k4, (vocabulary_size,), dtype=jnp.float32) * 0.02

    # Small shape from the module spec (batch=2, seq=8); force the Pallas path
    # so the kernel itself is exercised.
    B, S = 2, 8
    tokens = jax.random.randint(k1, (B, S), 0, vocabulary_size, dtype=jnp.int32)
    logits = char_level_model_forward(tokens, emb_table, lin_w, lin_b,
                                      force_pallas=True)
    jax.block_until_ready(logits)
    ref = reference_forward(tokens, emb_table, lin_w, lin_b)
    assert logits.shape == (B, S, vocabulary_size)
    assert jnp.allclose(logits, ref, atol=1e-5, rtol=1e-5), (
        float(jnp.max(jnp.abs(logits - ref))))

    # Default dispatch at this size takes the XLA fast path.
    logits_fast = char_level_model_forward(tokens, emb_table, lin_w, lin_b)
    jax.block_until_ready(logits_fast)
    assert jnp.allclose(logits_fast, ref, atol=1e-5, rtol=1e-5)

    # Medium shape: exercises a multi-tile / multi-chunk grid (4 tiles x 4
    # chunks at tile_rows=512) while keeping compile time small.
    B2, S2 = 2, 2048
    tokens2 = jax.random.randint(k5, (B2, S2), 0, vocabulary_size,
                                 dtype=jnp.int32)
    logits2 = char_level_model_forward(tokens2, emb_table, lin_w, lin_b,
                                       tile_rows=512, force_pallas=True)
    jax.block_until_ready(logits2)
    ref2 = reference_forward(tokens2, emb_table, lin_w, lin_b)
    assert jnp.allclose(logits2, ref2, atol=1e-5, rtol=1e-5), (
        float(jnp.max(jnp.abs(logits2 - ref2))))

    print("KERNEL_OK")
</pallas_src>

<mosaic_0001>
module attributes {stable_mosaic.version = 11 : i64} {
  func.func @_gather_kernel(%arg0: i32, %arg1: memref<2x128x1xi32, #tpu.memory_space<vmem>>, %arg2: memref<128x128xf32, #tpu.memory_space<vmem>>, %arg3: memref<128x128xf32, #tpu.memory_space<vmem>>) attributes {dimension_semantics = [#tpu.dimension_semantics<parallel>], iteration_bounds = array<i64: 1>, scalar_prefetch = 0 : i64, scratch_operands = 0 : i64, tpu.core_type = #tpu.core_type<tc>, window_params = [{transform_indices = @transform_0, window_bounds = array<i64: 2, 128, 1>}, {pipeline_mode = #tpu.pipeline_mode<synchronous>, transform_indices = @transform_1, window_bounds = array<i64: 128, 128>}, {transform_indices = @transform_2, window_bounds = array<i64: 128, 128>}]} {
    %c0 = arith.constant 0 : index
    %c0_0 = arith.constant 0 : index
    %0 = vector.load %arg2[%c0, %c0_0] : memref<128x128xf32, #tpu.memory_space<vmem>>, vector<128x128xf32>
    %1 = tpu.iota {dimensions = array<i32: 1>} : vector<128x128xi32>
    %c0_1 = arith.constant 0 : index
    %c0_2 = arith.constant 0 : index
    %c0_3 = arith.constant 0 : index
    %2 = vector.load %arg1[%c0_1, %c0_2, %c0_3] : memref<2x128x1xi32, #tpu.memory_space<vmem>>, vector<1x128x1xi32>
    %3 = vector.shape_cast %2 : vector<1x128x1xi32> to vector<128x1xi32>
    %4 = vector.broadcast %3 : vector<128x1xi32> to vector<128x128xi32>
    %5 = arith.cmpi eq, %4, %1 : vector<128x128xi32>
    %c1 = arith.constant 1 : index
    %c0_4 = arith.constant 0 : index
    %c0_5 = arith.constant 0 : index
    %6 = vector.load %arg1[%c1, %c0_4, %c0_5] : memref<2x128x1xi32, #tpu.memory_space<vmem>>, vector<1x128x1xi32>
    %7 = vector.shape_cast %6 : vector<1x128x1xi32> to vector<128x1xi32>
    %c64_i32 = arith.constant 64 : i32
    %8 = vector.broadcast %c64_i32 : i32 to vector<128x1xi32>
    %9 = arith.addi %7, %8 : vector<128x1xi32>
    %10 = vector.broadcast %9 : vector<128x1xi32> to vector<128x128xi32>
    %11 = arith.cmpi eq, %10, %1 : vector<128x128xi32>
    %12 = arith.ori %5, %11 : vector<128x128xi1>
    %13 = arith.extui %12 : vector<128x128xi1> to vector<128x128xi32>
    %14 = arith.sitofp %13 : vector<128x128xi32> to vector<128x128xf32>
    %cst = arith.constant dense<0.000000e+00> : vector<128x128xf32>
    %15 = tpu.matmul %14, %0, %cst {dimension_numbers = #tpu.dot_dimension_numbers<[1], [0], [0], [1], [0, 0, 1, 1], [], []>, precision = #tpu.contract_precision<fp32>} : vector<128x128xf32>, vector<128x128xf32>, vector<128x128xf32> -> vector<128x128xf32>
    %c0_6 = arith.constant 0 : index
    %c0_7 = arith.constant 0 : index
    %16 = vector.load %arg3[%c0_6, %c0_7] : memref<128x128xf32, #tpu.memory_space<vmem>>, vector<128x128xf32>
    tpu.vector_store %arg3[%c0_6, %c0_7], %15 {strides = array<i32>} : memref<128x128xf32, #tpu.memory_space<vmem>>, vector<128x128xf32>,
    return
  }
  func.func @transform_0(%arg0: i32) -> (i32, i32, i32) {
    %c0_i32 = arith.constant 0 : i32
    %c0_i32_0 = arith.constant 0 : i32
    %c0_i32_1 = arith.constant 0 : i32
    return %arg0, %c0_i32, %c0_i32_0 : i32, i32, i32
  }
  func.func @transform_1(%arg0: i32) -> (i32, i32) {
    %c0_i32 = arith.constant 0 : i32
    %c0_i32_0 = arith.constant 0 : i32
    %c0_i32_1 = arith.constant 0 : i32
    return %c0_i32, %c0_i32_0 : i32, i32
  }
  func.func @transform_2(%arg0: i32) -> (i32, i32) {
    %c0_i32 = arith.constant 0 : i32
    %c0_i32_0 = arith.constant 0 : i32
    return %arg0, %c0_i32 : i32, i32
  }
}

</mosaic_0001>

<bundles_post_ra>
// kernel: tpu_custom_call.1
= control target key start
LH: loop header
LB: loop body
LE: loop exit
PB: predicated region body
PF: predicated region fallthrough
CT: control target
= control target key end

     0   :  { %v2485_v3 = vmov 0   ;;  %s3360_s0 = inlined_call_operand.vmem [shape: s32[2,128,1], index: 0, kind: input, shape index: {}]   ;;  %s3361_s1 = inlined_call_operand.vmem [shape: f32[128,128], index: 1, kind: input, shape index: {}]   ;;  %s3362_s2 = inlined_call_operand.hbm [shape: f32[128,128], index: 2, kind: output, shape index: {}]  }
   0x1   :  { %v31_v0 = vld [vmem:[%s3360_s0 + $0x8] sm:$0xff]  ;;  %v30_v1 = vld [vmem:[%s3360_s0] sm:$0xff]  ;;  %2460 = vset.pattern.permute.xlu1 %v2485_v3  ;;  %2459 = vset.pattern.permute.xlu0 %v2485_v3  ;;  %v1575_v7 = vld [vmem:[%s3360_s0 + $0x90] sm:$0xff] }
   0x2   :  { %v1574_v2 = vld [vmem:[%s3360_s0 + $0x88] sm:$0xff]  ;;  %v1573_v4 = vld [vmem:[%s3360_s0 + $0x80] sm:$0xff]  ;;  %50 = vperm.xlu1 %2460, %v31_v0   ;;  %47 = vperm.xlu0 %2459, %v30_v1   ;;  %v129_v8 = vadd.s32 64, %v1575_v7  ;;  %v32_v9 = vld [vmem:[%s3360_s0 + $0x10] sm:$0xff] }
   0x3   :  { %v128_v5 = vadd.s32 64, %v1574_v2  ;;  %v127_v6 = vadd.s32 64, %v1573_v4  ;;  %v1576_v10 = vld [vmem:[%s3360_s0 + $0x98] sm:$0xff]  ;;  %v1577_v13 = vld [vmem:[%s3360_s0 + $0xa0] sm:$0xff]  ;;  %v2541_v15 = vld [vmem:[%s3361_s1 + $0x8] sm:$0xff] }
   0x4   :  { %v130_v11 = vadd.s32 64, %v1576_v10  ;;  %v33_v12 = vld [vmem:[%s3360_s0 + $0x18] sm:$0xff]  ;;  %v2536_v14 = vld [vmem:[%s3361_s1] sm:$0xff]  ;;  %v2547_v17 = vld [vmem:[%s3361_s1 + $0x10] sm:$0xff]  ;;  %v259_v19 = vand.u32 4294901760, %v2541_v15  ;;  %v131_v24 = vadd.s32 64, %v1577_v13 }
   0x5   :  { %v256_v16 = vand.u32 4294901760, %v2536_v14  ;;  %v2552_v18 = vld [vmem:[%s3361_s1 + $0x18] sm:$0xff]  ;;  %v262_v20 = vand.u32 4294901760, %v2547_v17  ;;  %v2560_v22 = vld [vmem:[%s3361_s1 + $0x20] sm:$0xff]  ;;  %v2565_v23 = vld [vmem:[%s3361_s1 + $0x28] sm:$0xff] }
   0x6   :  { %147 = vperm.xlu1 %2460, %v128_v5   ;;  %144 = vperm.xlu0 %2459, %v127_v6   ;;  %v265_v21 = vand.u32 4294901760, %v2552_v18  ;;  %v34_v26 = vld [vmem:[%s3360_s0 + $0x20] sm:$0xff]  ;;  %v1578_v27 = vld [vmem:[%s3360_s0 + $0xa8] sm:$0xff]  ;;  %v268_v29 = vand.u32 4294901760, %v2560_v22  ;;  %v271_v30 = vand.u32 4294901760, %v2565_v23  ;;  %v2592_v31 = vld [vmem:[%s3361_s1 + $0x30] sm:$0xff] }
   0x7   :  { %v2571_v25 = vpack.c.bf16 %v259_v19, %v256_v16  ;;  %v2597_v32 = vld [vmem:[%s3361_s1 + $0x38] sm:$0xff] }
   0x8   :  { %v2583_v28 = vpack.c.bf16 %v265_v21, %v262_v20 }
   0x9   :  { %2278 = vmatprep.subr.bf16.mxu0 %v2571_v25  ;;  %2182 = vmatprep.subr.bf16.mxu1 %v2571_v25 }
   0xa   :  { %150 = vperm.xlu1 %2460, %v129_v8   ;;  %53 = vperm.xlu0 %2459, %v32_v9  }
   0xe   :  { %153 = vperm.xlu1 %2460, %v130_v11   ;;  %56 = vperm.xlu0 %2459, %v33_v12  }
   0xf   :  { %7 = vsyncpa [#allocation3], 0  ;;  %2280 = vmatpush3.bf16.msra.mxu0 %v2571_v25  ;;  %2184 = vmatpush3.bf16.msra.mxu1 %v2571_v25  ;;  %v132_v33 = vadd.s32 64, %v1578_v27  ;;  %v35_v34 = vld [vmem:[%s3360_s0 + $0x28] sm:$0xff]  ;;  %v1579_v35 = vld [vmem:[%s3360_s0 + $0xb0] sm:$0xff]  ;;  %v2613_v36 = vpack.c.bf16 %v271_v30, %v268_v29  ;;  %v274_v37 = vand.u32 4294901760, %v2592_v31  ;;  %v2732_v7 = vsub.f32 %v2536_v14, %v256_v16 }
  0x10   :  { %2282 = vmatprep.subr.bf16.mxu0 %v2583_v28  ;;  %2186 = vmatprep.subr.bf16.mxu1 %v2583_v28  ;;  %v277_v38 = vand.u32 4294901760, %v2597_v32  ;;  %v2620_v39 = vld [vmem:[%s3361_s1 + $0x40] sm:$0xff]  ;;  %v2625_v40 = vld [vmem:[%s3361_s1 + $0x48] sm:$0xff]  ;;  %v133_v41 = vadd.s32 64, %v1579_v35  ;;  %v36_v42 = vld [vmem:[%s3360_s0 + $0x30] sm:$0xff]  ;;  %v2737_v8 = vsub.f32 %v2541_v15, %v259_v19  ;;  %v2762_v19 = vsub.f32 %v2547_v17, %v262_v20 }
  0x11   :  { %v1580_v43 = vld [vmem:[%s3360_s0 + $0xb8] sm:$0xff]  ;;  %v280_v45 = vand.u32 4294901760, %v2620_v39  ;;  %v283_v46 = vand.u32 4294901760, %v2625_v40  ;;  %v2648_v47 = vld [vmem:[%s3361_s1 + $0x50] sm:$0xff]  ;;  %v1581_v51 = vld [vmem:[%s3360_s0 + $0xc0] sm:$0xff]  ;;  %v499_v10 = vand.u32 4294901760, %v2732_v7 }
  0x12   :  { %156 = vperm.xlu1 %2460, %v131_v24   ;;  %59 = vperm.xlu0 %2459, %v34_v26   ;;  %v2641_v44 = vpack.c.bf16 %v277_v38, %v274_v37  ;;  %v2653_v48 = vld [vmem:[%s3361_s1 + $0x58] sm:$0xff]  ;;  %v134_v49 = vadd.s32 64, %v1580_v43  ;;  %v286_v53 = vand.u32 4294901760, %v2648_v47  ;;  %v2676_v55 = vld [vmem:[%s3361_s1 + $0x60] sm:$0xff]  ;;  %v2681_v56 = vld [vmem:[%s3361_s1 + $0x68] sm:$0xff]  ;;  %v135_v57 = vadd.s32 64, %v1581_v51 }
  0x13   :  { %2284 = vmatpush3.bf16.msra.mxu0 %v2583_v28  ;;  %2188 = vmatpush3.bf16.msra.mxu1 %v2583_v28  ;;  %v37_v50 = vld [vmem:[%s3360_s0 + $0x38] sm:$0xff]  ;;  %v2669_v52 = vpack.c.bf16 %v283_v46, %v280_v45  ;;  %v289_v54 = vand.u32 4294901760, %v2653_v48  ;;  %v38_v58 = vld [vmem:[%s3360_s0 + $0x40] sm:$0xff]  ;;  %v1582_v59 = vld [vmem:[%s3360_s0 + $0xc8] sm:$0xff]  ;;  %v292_v61 = vand.u32 4294901760, %v2676_v55  ;;  %v295_v62 = vand.u32 4294901760, %v2681_v56 }
  0x14   :  { %2286 = vmatprep.subr.bf16.mxu0 %v2613_v36  ;;  %2190 = vmatprep.subr.bf16.mxu1 %v2613_v36  ;;  %v2704_v63 = vld [vmem:[%s3361_s1 + $0x70] sm:$0xff]  ;;  %v2709_v0 = vld [vmem:[%s3361_s1 + $0x78] sm:$0xff]  ;;  %v136_v1 = vadd.s32 64, %v1582_v59  ;;  %v39_v2 = vld [vmem:[%s3360_s0 + $0x48] sm:$0xff]  ;;  %v506_v11 = vand.u32 4294901760, %v2737_v8  ;;  %v500_v15 = vsub.f32 %v2732_v7, %v499_v10  ;;  %v2769_v24 = vsub.f32 %v2552_v18, %v265_v21 }
  0x15   :  { %v2697_v60 = vpack.c.bf16 %v289_v54, %v286_v53  ;;  %v1583_v3 = vld [vmem:[%s3360_s0 + $0xd0] sm:$0xff]  ;;  %v2725_v4 = vpack.c.bf16 %v295_v62, %v292_v61  ;;  %v298_v5 = vand.u32 4294901760, %v2704_v63  ;;  %v301_v6 = vand.u32 4294901760, %v2709_v0  ;;  %v1584_v13 = vld [vmem:[%s3360_s0 + $0xd8] sm:$0xff]  ;;  %v1585_v20 = vld [vmem:[%s3360_s0 + $0xe0] sm:$0xff] }
  0x16   :  { %159 = vperm.xlu1 %2460, %v132_v33   ;;  %62 = vperm.xlu0 %2459, %v35_v34   ;;  %v137_v9 = vadd.s32 64, %v1583_v3  ;;  %v40_v12 = vld [vmem:[%s3360_s0 + $0x50] sm:$0xff]  ;;  %v507_v16 = vsub.f32 %v2737_v8, %v506_v11  ;;  %v138_v26 = vadd.s32 64, %v1584_v13  ;;  %v501_v27 = vand.u32 4294901760, %v500_v15  ;;  %v41_v17 = vld [vmem:[%s3360_s0 + $0x58] sm:$0xff] }
  0x17   :  { %2288 = vmatpush3.bf16.msra.mxu0 %v2613_v36  ;;  %2192 = vmatpush3.bf16.msra.mxu1 %v2613_v36  ;;  %v2755_v14 = vpack.c.bf16 %v301_v6, %v298_v5  ;;  %v513_v34 = vand.u32 4294901760, %v2762_v19  ;;  %v2780_v18 = vpack.c.bf16 %v506_v11, %v499_v10  ;;  %v520_v21 = vand.u32 4294901760, %v2769_v24 }
  0x18   :  { %2290 = vmatprep.subr.bf16.mxu0 %v2641_v44  ;;  %2194 = vmatprep.subr.bf16.mxu1 %v2641_v44  ;;  %v508_v33 = vand.u32 4294901760, %v507_v16  ;;  %v2794_v43 = vsub.f32 %v2565_v23, %v271_v30  ;;  %v139_v51 = vadd.s32 64, %v1585_v20  ;;  %v42_v23 = vld [vmem:[%s3360_s0 + $0x60] sm:$0xff]  ;;  %v1586_v30 = vld [vmem:[%s3360_s0 + $0xe8] sm:$0xff]  ;;  %v2818_v3 = vsub.f32 %v2592_v31, %v274_v37  ;;  %v1587_v31 = vld [vmem:[%s3360_s0 + $0xf0] sm:$0xff] }
  0x19   :  { %v2825_v10 = vsub.f32 %v2597_v32, %v277_v38  ;;  %v140_v11 = vadd.s32 64, %v1586_v30  ;;  %v43_v16 = vld [vmem:[%s3360_s0 + $0x68] sm:$0xff]  ;;  %v554_v38 = vsub.f32 %v2620_v39, %v280_v45  ;;  %v1588_v39 = vld [vmem:[%s3360_s0 + $0xf8] sm:$0xff] }
  0x1a   :  { %162 = vperm.xlu1 %2460, %v133_v41   ;;  %65 = vperm.xlu0 %2459, %v36_v42   ;;  %v2783_v35 = vpack.c.bf16 %v508_v33, %v501_v27  ;;  %v514_v41 = vsub.f32 %v2762_v19, %v513_v34  ;;  %v2789_v42 = vsub.f32 %v2560_v22, %v268_v29  ;;  %v534_v29 = vand.u32 4294901760, %v2794_v43 }
  0x1b   :  { %2292 = vmatpush3.bf16.msra.mxu0 %v2641_v44  ;;  %2196 = vmatpush3.bf16.msra.mxu1 %v2641_v44  ;;  %v541_v15 = vand.u32 4294901760, %v2818_v3  ;;  %v548_v37 = vand.u32 4294901760, %v2825_v10  ;;  %v561_v27 = vsub.f32 %v2625_v40, %v283_v46 }
  0x1c   :  { %2294 = vmatprep.subr.bf16.mxu0 %v2669_v52  ;;  %2198 = vmatprep.subr.bf16.mxu1 %v2669_v52  ;;  %v527_v22 = vand.u32 4294901760, %v2789_v42 }
  0x1d   :  { %v542_v32 = vsub.f32 %v2818_v3, %v541_v15  ;;  %v2844_v33 = vpack.c.bf16 %v548_v37, %v541_v15 }
  0x1e   :  { %165 = vperm.xlu1 %2460, %v134_v49   ;;  %68 = vperm.xlu0 %2459, %v37_v50   ;;  %v2798_v49 = vpack.c.bf16 %v520_v21, %v513_v34  ;;  %v521_v50 = vsub.f32 %v2769_v24, %v520_v21  ;;  %v2811_v59 = vpack.c.bf16 %v534_v29, %v527_v22  ;;  %v555_v21 = vand.u32 4294901760, %v554_v38 }
  0x1f   :  { %2296 = vmatpush3.bf16.msra.mxu0 %v2669_v52  ;;  %2200 = vmatpush3.bf16.msra.mxu1 %v2669_v52  ;;  %v549_v34 = vsub.f32 %v2825_v10, %v548_v37  ;;  %v543_v20 = vand.u32 4294901760, %v542_v32 }
  0x20   :  { %2298 = vmatprep.subr.bf16.mxu0 %v2697_v60  ;;  %2202 = vmatprep.subr.bf16.mxu1 %v2697_v60  ;;  %v556_v46 = vsub.f32 %v554_v38, %v555_v21 }
  0x21   :  { %v550_v45 = vand.u32 4294901760, %v549_v34 }
  0x22   :  { %168 = vperm.xlu1 %2460, %v135_v57   ;;  %71 = vperm.xlu0 %2459, %v38_v58   ;;  %v515_v57 = vand.u32 4294901760, %v514_v41  ;;  %v522_v58 = vand.u32 4294901760, %v521_v50  ;;  %v562_v41 = vand.u32 4294901760, %v561_v27  ;;  %v44_v50 = vld [vmem:[%s3360_s0 + $0x70] sm:$0xff]  ;;  %v557_v30 = vand.u32 4294901760, %v556_v46 }
  0x23   :  { %2300 = vmatpush3.bf16.msra.mxu0 %v2697_v60  ;;  %2204 = vmatpush3.bf16.msra.mxu1 %v2697_v60 }
  0x24   :  { %2302 = vmatprep.subr.bf16.mxu0 %v2725_v4  ;;  %2206 = vmatprep.subr.bf16.mxu1 %v2725_v4  ;;  %v2853_v40 = vpack.c.bf16 %v562_v41, %v555_v21 }
  0x26   :  { %171 = vperm.xlu1 %2460, %v136_v1   ;;  %74 = vperm.xlu0 %2459, %v39_v2   ;;  %v528_v1 = vsub.f32 %v2789_v42, %v527_v22  ;;  %v535_v2 = vsub.f32 %v2794_v43, %v534_v29  ;;  %v2858_v22 = vpack.c.bf16 %v550_v45, %v543_v20 }
  0x27   :  { %2304 = vmatpush3.bf16.msra.mxu0 %v2725_v4  ;;  %2208 = vmatpush3.bf16.msra.mxu1 %v2725_v4  ;;  %v575_v29 = vsub.f32 %v2653_v48, %v289_v54  ;;  %v589_v48 = vsub.f32 %v2681_v56, %v295_v62  ;;  %v603_v56 = vsub.f32 %v2709_v0, %v301_v6 }
  0x28   :  { %2306 = vmatprep.subr.bf16.mxu0 %v2755_v14  ;;  %2210 = vmatprep.subr.bf16.mxu1 %v2755_v14  ;;  %v536_v13 = vand.u32 4294901760, %v535_v2  ;;  %v45_v2 = vld [vmem:[%s3360_s0 + $0x78] sm:$0xff]  ;;  %v2898_v0 = vpack.c.bf16 %v2769_v24, %v2762_v19  ;;  %v2906_v6 = vpack.c.bf16 %v2825_v10, %v2818_v3  ;;  %v2486_v3 = vmov 0.0   ;;  %s2488_s0 = smov [#allocation2]  }
  0x29   :  { %s1562_s20 = sshll.u32 %s2488_s0, 4  ;;  %s1563_s20 = int_to_ptr.vmem [resolvable:$true] %s1562_s20 }
  0x2a   :  { %174 = vperm.xlu1 %2460, %v137_v9   ;;  %77 = vperm.xlu0 %2459, %v40_v12   ;;  %v2820_v9 = vpack.c.bf16 %v522_v58, %v515_v57  ;;  %v529_v12 = vand.u32 4294901760, %v528_v1  ;;  %v568_v57 = vsub.f32 %v2648_v47, %v286_v53  ;;  %v582_v53 = vsub.f32 %v2676_v55, %v292_v61  ;;  %s2461_s21 = scalar_lea.vmem %s1563_s20, 2048  ;;  %p2466_p1 = scmp.lt.s32.totalorder %s1563_s20, %s1563_s20 }
  0x2b   :  { %2308 = vmatpush3.bf16.msra.mxu0 %v2755_v14  ;;  %2212 = vmatpush3.bf16.msra.mxu1 %v2755_v14  ;;  %v596_v55 = vsub.f32 %v2704_v63, %v298_v5  ;;  %v2894_v63 = vpack.c.bf16 %v2737_v8, %v2732_v7  ;;  %v2902_v5 = vpack.c.bf16 %v2794_v43, %v2789_v42  ;;  %v28_v8 = vlaneseq  ;;  %p2462_p0 = scmp.ne.s32.totalorder %s1563_s20, %s2461_s21  ;;  %p2467_p2 = scmp.lt.s32.totalorder %s2461_s21, %s2461_s21 }
  0x2c   :  { %2310 = vmatprep.subr.bf16.mxu0 %v2780_v18  ;;  %2214 = vmatprep.subr.bf16.mxu1 %v2783_v35  ;;  %v569_v1 = vand.u32 4294901760, %v568_v57 }
  0x2d   :  { %v597_v21 = vand.u32 4294901760, %v596_v55  ;;  %v2914_v7 = vpack.c.bf16 %v603_v56, %v596_v55  ;;  %v2916_v24 = vand.u32 127, %v28_v8  ;;  %p2468_p3 = por %p2467_p2, %p2466_p1 }
  0x2e   :  { %177 = vperm.xlu1 %2460, %v138_v26   ;;  %80 = vperm.xlu0 %2459, %v41_v17   ;;  %v2835_v26 = vpack.c.bf16 %v536_v13, %v529_v12  ;;  %v141_v17 = vadd.s32 64, %v1587_v31  ;;  %v570_v47 = vsub.f32 %v568_v57, %v569_v1  ;;  %v590_v31 = vand.u32 4294901760, %v589_v48 }
  0x2f   :  { %p2469_p4 = pnand %p2468_p3, %p2462_p0 }
  0x30   :  { %v571_v15 = vand.u32 4294901760, %v570_v47 }
  0x32   :  { %180 = vperm.xlu1 %2460, %v139_v51   ;;  %83 = vperm.xlu0 %2459, %v42_v23   ;;  %v563_v51 = vsub.f32 %v561_v27, %v562_v41  ;;  %v142_v23 = vadd.s32 64, %v1588_v39  ;;  %v604_v41 = vand.u32 4294901760, %v603_v56  ;;  %v598_v39 = vsub.f32 %v596_v55, %v597_v21 }
  0x34   :  { %v564_v58 = vand.u32 4294901760, %v563_v51  ;;  %v2888_v45 = vpack.c.bf16 %v604_v41, %v597_v21  ;;  %v605_v46 = vsub.f32 %v603_v56, %v604_v41  ;;  %v599_v51 = vand.u32 4294901760, %v598_v39 }
  0x36   :  { %183 = vperm.xlu1 %2460, %v140_v11   ;;  %86 = vperm.xlu0 %2459, %v43_v16   ;;  %v576_v11 = vand.u32 4294901760, %v575_v29  ;;  %v2866_v12 = vpack.c.bf16 %v564_v58, %v557_v30  ;;  %v583_v16 = vand.u32 4294901760, %v582_v53  ;;  %v2908_v58 = vpack.c.bf16 %v561_v27, %v554_v38 }
  0x38   :  { %v2874_v54 = vpack.c.bf16 %v576_v11, %v569_v1  ;;  %v577_v13 = vsub.f32 %v575_v29, %v576_v11  ;;  %v2876_v32 = vpack.c.bf16 %v590_v31, %v583_v16  ;;  %v584_v34 = vsub.f32 %v582_v53, %v583_v16 }
  0x39   :  { %v2910_v1 = vpack.c.bf16 %v575_v29, %v568_v57 }
  0x3a   :  { %186 = vperm.xlu1 %2460, %v141_v17   ;;  %89 = vperm.xlu0 %2459, %v44_v50   ;;  %v578_v37 = vand.u32 4294901760, %v577_v13  ;;  %v591_v17 = vsub.f32 %v589_v48, %v590_v31  ;;  %v585_v62 = vand.u32 4294901760, %v584_v34 }
  0x3c   :  { %v2881_v61 = vpack.c.bf16 %v578_v37, %v571_v15  ;;  %v592_v20 = vand.u32 4294901760, %v591_v17 }
  0x3e   :  { %189 = vperm.xlu1 %2460, %v142_v23   ;;  %92 = vperm.xlu0 %2459, %v45_v2   ;;  %v2886_v50 = vpack.c.bf16 %v592_v20, %v585_v62  ;;  %v606_v23 = vand.u32 4294901760, %v605_v46  ;;  %v2912_v2 = vpack.c.bf16 %v589_v48, %v582_v53 }
  0x40   :  { %v2890_v30 = vpack.c.bf16 %v606_v23, %v599_v51 }
  0x81   :  { %v51_v11 = vpop.permute.xlu1 %50  ;;  %v48_v19 = vpop.permute.xlu0 %47 }
  0x82   :  { %vm95_vm0 = vcmp.eq.s32.totalorder %v51_v11, %v2916_v24  ;;  %vm94_vm3 = vcmp.eq.s32.totalorder %v48_v19, %v2916_v24 }
  0x85   :  { %v148_v47 = vpop.permute.xlu1 %147  ;;  %v145_v42 = vpop.permute.xlu0 %144 }
  0x86   :  { %vm192_vm1 = vcmp.eq.s32.totalorder %v148_v47, %v2916_v24  ;;  %vm191_vm2 = vcmp.eq.s32.totalorder %v145_v42, %v2916_v24 }
  0x87   :  { %vm2922_vm4 = vmor %vm95_vm0, %vm192_vm1 }
  0x88   :  { %v1590_v10 = vsel %vm2922_vm4, 1.0, %v2486_v3  ;;  %vm2929_vm5 = vmor %vm94_vm3, %vm191_vm2 }
  0x89   :  { %v2933_v27 = vsub.f32 %v1590_v10, %v1590_v10  ;;  %v1589_v57 = vsel %vm2929_vm5, 1.0, %v2486_v3  ;;  %v151_v29 = vpop.permute.xlu1 %150  ;;  %v54_v53 = vpop.permute.xlu0 %53 }
  0x8a   :  { %v2938_v48 = vsub.f32 %v1589_v57, %v1589_v57  ;;  %vm193_vm6 = vcmp.eq.s32.totalorder %v151_v29, %v2916_v24  ;;  %vm96_vm7 = vcmp.eq.s32.totalorder %v54_v53, %v2916_v24 }
  0x8b   :  { %vm2942_vm8 = vmor %vm96_vm7, %vm193_vm6  ;;  %v348_v15 = vand.u32 4294901760, %v2933_v27 }
  0x8c   :  { %v1591_v16 = vsel %vm2942_vm8, 1.0, %v2486_v3  ;;  %v338_v31 = vand.u32 4294901760, %v2938_v48 }
  0x8d   :  { %v2951_v37 = vsub.f32 %v1591_v16, %v1591_v16  ;;  %v154_v34 = vpop.permute.xlu1 %153  ;;  %v57_v17 = vpop.permute.xlu0 %56  ;;  %v349_v55 = vsub.f32 %v2933_v27, %v348_v15 }
  0x8e   :  { %vm194_vm9 = vcmp.eq.s32.totalorder %v154_v34, %v2916_v24  ;;  %vm97_vm10 = vcmp.eq.s32.totalorder %v57_v17, %v2916_v24  ;;  %2045 = vmatprep.mubr.f32.mxu0 %v338_v31  ;;  %v339_v56 = vsub.f32 %v2938_v48, %v338_v31 }
  0x8f   :  { %vm2957_vm11 = vmor %vm97_vm10, %vm194_vm9  ;;  %2046 = vmatmul.mubr.f32.vlgmr.msra.gmra.mrb[0].mxu0 %v348_v15  ;;  %v358_v20 = vand.u32 4294901760, %v2951_v37  ;;  %v350_v21 = vand.u32 4294901760, %v349_v55 }
  0x90   :  { %v1592_v41 = vsel %vm2957_vm11, 1.0, %v2486_v3  ;;  %v340_v39 = vand.u32 4294901760, %v339_v56  ;;  %2312 = vmatpush3.bf16.msra.mxu0 %v2780_v18 }
  0x91   :  { %v2966_v46 = vsub.f32 %v1592_v41, %v1592_v41  ;;  %v157_v51 = vpop.permute.xlu1 %156  ;;  %v60_v23 = vpop.permute.xlu0 %59  ;;  %2048 = vmatprep.mubr.f32.mxu0 %v358_v20  ;;  %v359_v8 = vsub.f32 %v2951_v37, %v358_v20  ;;  %2314 = vmatprep.subr.bf16.mxu0 %v2798_v49 }
  0x92   :  { %vm195_vm12 = vcmp.eq.s32.totalorder %v157_v51, %v2916_v24  ;;  %vm98_vm13 = vcmp.eq.s32.totalorder %v60_v23, %v2916_v24  ;;  %1877 = vmatprep.mubr.f32.mxu1 %v340_v39 }
  0x93   :  { %vm2972_vm14 = vmor %vm98_vm13, %vm195_vm12  ;;  %1878 = vmatmul.mubr.f32.vlgmr.msra.gmra.mrb[0].mxu1 %v350_v21  ;;  %v360_v18 = vand.u32 4294901760, %v359_v8  ;;  %v368_v19 = vand.u32 4294901760, %v2966_v46 }
  0x94   :  { %v1593_v47 = vsel %vm2972_vm14, 1.0, %v2486_v3  ;;  %2216 = vmatpush3.bf16.msra.mxu1 %v2783_v35  ;;  %2316 = vmatpush3.bf16.msra.mxu0 %v2798_v49 }
  0x95   :  { %v2982_v42 = vsub.f32 %v1593_v47, %v1593_v47  ;;  %v160_v10 = vpop.permute.xlu1 %159  ;;  %v63_v57 = vpop.permute.xlu0 %62  ;;  %1880 = vmatprep.mubr.f32.mxu1 %v360_v18  ;;  %2049 = vmatmul.mubr.f32.gmra.mrb[2].mxu0 %v368_v19  ;;  %v369_v29 = vsub.f32 %v2966_v46, %v368_v19 }
  0x96   :  { %vm196_vm15 = vcmp.eq.s32.totalorder %v160_v10, %v2916_v24  ;;  %vm99_vm0 = vcmp.eq.s32.totalorder %v63_v57, %v2916_v24  ;;  %2218 = vmatprep.subr.bf16.mxu1 %v2820_v9  ;;  %2318 = vmatprep.subr.bf16.mxu0 %v2811_v59 }
  0x97   :  { %vm2989_vm1 = vmor %vm99_vm0, %vm196_vm15  ;;  %v370_v49 = vand.u32 4294901760, %v369_v29  ;;  %v378_v53 = vand.u32 4294901760, %v2982_v42 }
  0x98   :  { %v1594_v15 = vsel %vm2989_vm1, 1.0, %v2486_v3  ;;  %2220 = vmatpush3.bf16.msra.mxu1 %v2820_v9  ;;  %2320 = vmatpush3.bf16.msra.mxu0 %v2811_v59 }
  0x99   :  { %v2999_v16 = vsub.f32 %v1594_v15, %v1594_v15  ;;  %v163_v31 = vpop.permute.xlu1 %162  ;;  %v66_v34 = vpop.permute.xlu0 %65  ;;  %1881 = vmatmul.mubr.f32.gmra.mrb[2].mxu1 %v370_v49  ;;  %2051 = vmatprep.mubr.f32.mxu0 %v378_v53  ;;  %v379_v17 = vsub.f32 %v2982_v42, %v378_v53 }
  0x9a   :  { %vm197_vm2 = vcmp.eq.s32.totalorder %v163_v31, %v2916_v24  ;;  %vm100_vm3 = vcmp.eq.s32.totalorder %v66_v34, %v2916_v24  ;;  %2222 = vmatprep.subr.bf16.mxu1 %v2835_v26  ;;  %2322 = vmatprep.subr.bf16.mxu0 %v2844_v33 }
  0x9b   :  { %vm3006_vm6 = vmor %vm100_vm3, %vm197_vm2  ;;  %v380_v59 = vand.u32 4294901760, %v379_v17  ;;  %v388_v55 = vand.u32 4294901760, %v2999_v16 }
  0x9c   :  { %v1595_v56 = vsel %vm3006_vm6, 1.0, %v2486_v3  ;;  %2224 = vmatpush3.bf16.msra.mxu1 %v2835_v26  ;;  %2324 = vmatpush3.bf16.msra.mxu0 %v2844_v33 }
  0x9d   :  { %v3016_v20 = vsub.f32 %v1595_v56, %v1595_v56  ;;  %v166_v21 = vpop.permute.xlu1 %165  ;;  %v69_v41 = vpop.permute.xlu0 %68  ;;  %1883 = vmatprep.mubr.f32.mxu1 %v380_v59  ;;  %2052 = vmatmul.mubr.f32.gmra.mrb[4].mxu0 %v388_v55  ;;  %v389_v39 = vsub.f32 %v2999_v16, %v388_v55 }
  0x9e   :  { %vm198_vm7 = vcmp.eq.s32.totalorder %v166_v21, %v2916_v24  ;;  %vm101_vm9 = vcmp.eq.s32.totalorder %v69_v41, %v2916_v24  ;;  %2226 = vmatprep.subr.bf16.mxu1 %v2858_v22  ;;  %2326 = vmatprep.subr.bf16.mxu0 %v2853_v40 }
  0x9f   :  { %vm3023_vm10 = vmor %vm101_vm9, %vm198_vm7  ;;  %v390_v33 = vand.u32 4294901760, %v389_v39  ;;  %v398_v51 = vand.u32 4294901760, %v3016_v20 }
  0xa0   :  { %v1596_v23 = vsel %vm3023_vm10, 1.0, %v2486_v3  ;;  %2228 = vmatpush3.bf16.msra.mxu1 %v2858_v22  ;;  %2328 = vmatpush3.bf16.msra.mxu0 %v2853_v40 }
  0xa1   :  { %v3033_v8 = vsub.f32 %v1596_v23, %v1596_v23  ;;  %v169_v18 = vpop.permute.xlu1 %168  ;;  %v72_v19 = vpop.permute.xlu0 %71  ;;  %1884 = vmatmul.mubr.f32.gmra.mrb[4].mxu1 %v390_v33  ;;  %2054 = vmatprep.mubr.f32.mxu0 %v398_v51  ;;  %v399_v47 = vsub.f32 %v3016_v20, %v398_v51 }
  0xa2   :  { %vm199_vm12 = vcmp.eq.s32.totalorder %v169_v18, %v2916_v24  ;;  %vm102_vm13 = vcmp.eq.s32.totalorder %v72_v19, %v2916_v24  ;;  %2230 = vmatprep.subr.bf16.mxu1 %v2866_v12  ;;  %2330 = vmatprep.subr.bf16.mxu0 %v2874_v54 }
  0xa3   :  { %vm3040_vm15 = vmor %vm102_vm13, %vm199_vm12  ;;  %v400_v40 = vand.u32 4294901760, %v399_v47  ;;  %v408_v10 = vand.u32 4294901760, %v3033_v8 }
  0xa4   :  { %v1597_v57 = vsel %vm3040_vm15, 1.0, %v2486_v3  ;;  %2232 = vmatpush3.bf16.msra.mxu1 %v2866_v12  ;;  %2332 = vmatpush3.bf16.msra.mxu0 %v2874_v54 }
  0xa5   :  { %v3050_v29 = vsub.f32 %v1597_v57, %v1597_v57  ;;  %v172_v49 = vpop.permute.xlu1 %171  ;;  %v75_v53 = vpop.permute.xlu0 %74  ;;  %1886 = vmatprep.mubr.f32.mxu1 %v400_v40  ;;  %2055 = vmatmul.mubr.f32.gmra.mrb[6].mxu0 %v408_v10  ;;  %v409_v15 = vsub.f32 %v3033_v8, %v408_v10 }
  0xa6   :  { %vm200_vm0 = vcmp.eq.s32.totalorder %v172_v49, %v2916_v24  ;;  %vm103_vm2 = vcmp.eq.s32.totalorder %v75_v53, %v2916_v24  ;;  %2234 = vmatprep.subr.bf16.mxu1 %v2881_v61  ;;  %2334 = vmatprep.subr.bf16.mxu0 %v2876_v32  ;;  %v3391_v49 = vmov 0 }
  0xa7   :  { %vm3057_vm3 = vmor %vm103_vm2, %vm200_vm0  ;;  %v410_v54 = vand.u32 4294901760, %v409_v15  ;;  %v418_v31 = vand.u32 4294901760, %v3050_v29 }
  0xa8   :  { %v1598_v34 = vsel %vm3057_vm3, 1.0, %v2486_v3  ;;  %2236 = vmatpush3.bf16.msra.mxu1 %v2881_v61  ;;  %2336 = vmatpush3.bf16.msra.mxu0 %v2876_v32 }
  0xa9   :  { %v3067_v17 = vsub.f32 %v1598_v34, %v1598_v34  ;;  %v175_v59 = vpop.permute.xlu1 %174  ;;  %v78_v55 = vpop.permute.xlu0 %77  ;;  %1887 = vmatmul.mubr.f32.gmra.mrb[6].mxu1 %v410_v54  ;;  %2057 = vmatprep.mubr.f32.mxu0 %v418_v31  ;;  %v419_v56 = vsub.f32 %v3050_v29, %v418_v31 }
  0xaa   :  { %vm201_vm7 = vcmp.eq.s32.totalorder %v175_v59, %v2916_v24  ;;  %vm104_vm9 = vcmp.eq.s32.totalorder %v78_v55, %v2916_v24  ;;  %2238 = vmatprep.subr.bf16.mxu1 %v2886_v50  ;;  %2338 = vmatprep.subr.bf16.mxu0 %v2888_v45  ;;  %v3393_v55 = vmov 0 }
  0xab   :  { %vm3074_vm12 = vmor %vm104_vm9, %vm201_vm7  ;;  %v420_v32 = vand.u32 4294901760, %v419_v56  ;;  %v428_v21 = vand.u32 4294901760, %v3067_v17 }
  0xac   :  { %v1599_v41 = vsel %vm3074_vm12, 1.0, %v2486_v3  ;;  %2240 = vmatpush3.bf16.msra.mxu1 %v2886_v50  ;;  %2340 = vmatpush3.bf16.msra.mxu0 %v2888_v45 }
  0xad   :  { %v3084_v39 = vsub.f32 %v1599_v41, %v1599_v41  ;;  %v178_v33 = vpop.permute.xlu1 %177  ;;  %v81_v51 = vpop.permute.xlu0 %80  ;;  %1889 = vmatprep.mubr.f32.mxu1 %v420_v32  ;;  %2058 = vmatmul.mubr.f32.gmra.mrb[8].mxu0 %v428_v21  ;;  %v429_v23 = vsub.f32 %v3067_v17, %v428_v21 }
  0xae   :  { %vm202_vm13 = vcmp.eq.s32.totalorder %v178_v33, %v2916_v24  ;;  %vm105_vm0 = vcmp.eq.s32.totalorder %v81_v51, %v2916_v24  ;;  %2242 = vmatprep.subr.bf16.mxu1 %v2890_v30  ;;  %2342 = vmatprep.subr.bf16.mxu0 %v2571_v25 }
  0xaf   :  { %vm3091_vm2 = vmor %vm105_vm0, %vm202_vm13  ;;  %v430_v45 = vand.u32 4294901760, %v429_v23  ;;  %v438_v18 = vand.u32 4294901760, %v3084_v39 }
  0xb0   :  { %v1600_v19 = vsel %vm3091_vm2, 1.0, %v2486_v3  ;;  %2244 = vmatpush3.bf16.msra.mxu1 %v2890_v30 }
  0xb1   :  { %v3100_v47 = vsub.f32 %v1600_v19, %v1600_v19  ;;  %v181_v40 = vpop.permute.xlu1 %180  ;;  %v84_v10 = vpop.permute.xlu0 %83  ;;  %1890 = vmatmul.mubr.f32.gmra.mrb[8].mxu1 %v430_v45  ;;  %2060 = vmatprep.mubr.f32.mxu0 %v438_v18  ;;  %v439_v57 = vsub.f32 %v3084_v39, %v438_v18 }
  0xb2   :  { %vm203_vm7 = vcmp.eq.s32.totalorder %v181_v40, %v2916_v24  ;;  %vm106_vm9 = vcmp.eq.s32.totalorder %v84_v10, %v2916_v24  ;;  %2246 = vmatprep.subr.bf16.mxu1 %v2894_v63 }
  0xb3   :  { %vm3106_vm13 = vmor %vm106_vm9, %vm203_vm7  ;;  %v440_v53 = vand.u32 4294901760, %v439_v57  ;;  %v448_v30 = vand.u32 4294901760, %v3100_v47 }
  0xb4   :  { %v3392_v49 = vsel %vm3106_vm13, 4294967295, %v3391_v49  ;;  %v1601_v15 = vsel %vm3106_vm13, 1.0, %v2486_v3 }
  0xb5   :  { %v3114_v54 = vsub.f32 %v1601_v15, %v1601_v15  ;;  %v184_v31 = vpop.permute.xlu1 %183  ;;  %v87_v34 = vpop.permute.xlu0 %86  ;;  %1892 = vmatprep.mubr.f32.mxu1 %v440_v53  ;;  %2061 = vmatmul.mubr.f32.gmra.mrb[10].mxu0 %v448_v30  ;;  %v449_v59 = vsub.f32 %v3100_v47, %v448_v30 }
  0xb6   :  { %vm204_vm0 = vcmp.eq.s32.totalorder %v184_v31, %v2916_v24  ;;  %vm107_vm7 = vcmp.eq.s32.totalorder %v87_v34, %v2916_v24 }
  0xb7   :  { %vm3119_vm9 = vmor %vm107_vm7, %vm204_vm0  ;;  %v450_v56 = vand.u32 4294901760, %v449_v59  ;;  %v458_v32 = vand.u32 4294901760, %v3114_v54 }
  0xb8   :  { %v3394_v55 = vsel %vm3119_vm9, 4294967295, %v3393_v55  ;;  %v1602_v21 = vsel %vm3119_vm9, 1.0, %v2486_v3 }
  0xb9   :  { %v3127_v41 = vsub.f32 %v1602_v21, %v1602_v21  ;;  %v187_v33 = vpop.permute.xlu1 %186  ;;  %v90_v51 = vpop.permute.xlu0 %89  ;;  %1893 = vmatmul.mubr.f32.gmra.mrb[10].mxu1 %v450_v56  ;;  %2063 = vmatprep.mubr.f32.mxu0 %v458_v32  ;;  %v459_v23 = vsub.f32 %v3114_v54, %v458_v32 }
  0xba   :  { %vm205_vm0 = vcmp.eq.s32.totalorder %v187_v33, %v2916_v24  ;;  %vm108_vm7 = vcmp.eq.s32.totalorder %v90_v51, %v2916_v24  ;;  %v2487_v51 = vmov 1.0  }
  0xbb   :  { %vm3132_vm13 = vmor %vm108_vm7, %vm205_vm0  ;;  %v460_v18 = vand.u32 4294901760, %v459_v23  ;;  %v468_v19 = vand.u32 4294901760, %v3127_v41 }
  0xbc   :  { %v1603_v40 = vsel %vm3132_vm13, 1.0, %v2486_v3 }
  0xbd   :  { %v3140_v10 = vsub.f32 %v1603_v40, %v1603_v40  ;;  %v190_v57 = vpop.permute.xlu1 %189  ;;  %v93_v53 = vpop.permute.xlu0 %92  ;;  %1895 = vmatprep.mubr.f32.mxu1 %v460_v18  ;;  %2064 = vmatmul.mubr.f32.gmra.mrb[12].mxu0 %v468_v19  ;;  %v469_v30 = vsub.f32 %v3127_v41, %v468_v19 }
  0xbe   :  { %vm206_vm0 = vcmp.eq.s32.totalorder %v190_v57, %v2916_v24  ;;  %vm109_vm7 = vcmp.eq.s32.totalorder %v93_v53, %v2916_v24 }
  0xbf   :  { %vm3145_vm9 = vmor %vm109_vm7, %vm206_vm0  ;;  %v470_v31 = vand.u32 4294901760, %v469_v30  ;;  %v478_v34 = vand.u32 4294901760, %v3140_v10  ;;  %vm3399_vm0 = vnez %v3392_v49  ;;  %vm3400_vm7 = vnez %v3394_v55 }
  0xc0   :  { %v1604_v59 = vsel %vm3145_vm9, 1.0, %v2486_v3 }
  0xc1   :  { %v3153_v56 = vsub.f32 %v1604_v59, %v1604_v59  ;;  %1896 = vmatmul.mubr.f32.gmra.mrb[12].mxu1 %v470_v31  ;;  %2066 = vmatprep.mubr.f32.mxu0 %v478_v34  ;;  %v479_v32 = vsub.f32 %v3140_v10, %v478_v34 }
  0xc3   :  { %v480_v21 = vand.u32 4294901760, %v479_v32  ;;  %v488_v24 = vand.u32 4294901760, %v3153_v56 }
  0xc5   :  { %1898 = vmatprep.mubr.f32.mxu1 %v480_v21  ;;  %2067 = vmatmul.mubr.f32.gmra.mrb[14].mxu0 %v488_v24  ;;  %v489_v33 = vsub.f32 %v3153_v56, %v488_v24 }
  0xc6   :  { %2101 = vmatprep.mubr.msk.f32.mxu0 %vm2929_vm5, %v2487_v51 }
  0xc7   :  { %v490_v23 = vand.u32 4294901760, %v489_v33 }
  0xc9   :  { %1899 = vmatmul.mubr.f32.gmra.mrb[14].mxu1 %v490_v23  ;;  %2102 = vmatmul.mubr.msk.f32.vlgmr.msra.gmra.mrb[0].mxu0 %vm2922_vm4, %v2487_v51 }
  0xca   :  { %1933 = vmatprep.mubr.msk.f32.mxu1 %vm2929_vm5, %v2487_v51  ;;  %2104 = vmatprep.mubr.msk.f32.mxu0 %vm2942_vm8, %v2487_v51 }
  0xcb   :  { %2344 = vmatpush3.bf16.msra.mxu0 %v2571_v25 }
  0xcc   :  { %2346 = vmatprep.subr.bf16.mxu0 %v2583_v28 }
  0xcd   :  { %1934 = vmatmul.mubr.msk.f32.vlgmr.msra.gmra.mrb[0].mxu1 %vm2922_vm4, %v2487_v51  ;;  %2105 = vmatmul.mubr.msk.f32.gmra.mrb[2].mxu0 %vm2957_vm11, %v2487_v51 }
  0xce   :  { %2248 = vmatpush3.bf16.msra.mxu1 %v2894_v63  ;;  %1936 = vmatprep.mubr.msk.f32.mxu1 %vm2942_vm8, %v2487_v51 }
  0xcf   :  { %2107 = vmatprep.mubr.msk.f32.mxu0 %vm2972_vm14, %v2487_v51  ;;  %2348 = vmatpush3.bf16.msra.mxu0 %v2583_v28 }
  0xd0   :  { %2250 = vmatprep.subr.bf16.mxu1 %v2898_v0  ;;  %2350 = vmatprep.subr.bf16.mxu0 %v2613_v36 }
  0xd1   :  { %1937 = vmatmul.mubr.msk.f32.gmra.mrb[2].mxu1 %vm2957_vm11, %v2487_v51  ;;  %2108 = vmatmul.mubr.msk.f32.gmra.mrb[4].mxu0 %vm2989_vm1, %v2487_v51 }
  0xd2   :  { %2252 = vmatpush3.bf16.msra.mxu1 %v2898_v0  ;;  %1939 = vmatprep.mubr.msk.f32.mxu1 %vm2972_vm14, %v2487_v51 }
  0xd3   :  { %2110 = vmatprep.mubr.msk.f32.mxu0 %vm3006_vm6, %v2487_v51  ;;  %2352 = vmatpush3.bf16.msra.mxu0 %v2613_v36 }
  0xd4   :  { %2254 = vmatprep.subr.bf16.mxu1 %v2902_v5  ;;  %2354 = vmatprep.subr.bf16.mxu0 %v2641_v44 }
  0xd5   :  { %1940 = vmatmul.mubr.msk.f32.gmra.mrb[4].mxu1 %vm2989_vm1, %v2487_v51  ;;  %2111 = vmatmul.mubr.msk.f32.gmra.mrb[6].mxu0 %vm3023_vm10, %v2487_v51 }
  0xd6   :  { %2256 = vmatpush3.bf16.msra.mxu1 %v2902_v5  ;;  %1942 = vmatprep.mubr.msk.f32.mxu1 %vm3006_vm6, %v2487_v51 }
  0xd7   :  { %2113 = vmatprep.mubr.msk.f32.mxu0 %vm3040_vm15, %v2487_v51  ;;  %2356 = vmatpush3.bf16.msra.mxu0 %v2641_v44 }
  0xd8   :  { %2258 = vmatprep.subr.bf16.mxu1 %v2906_v6  ;;  %2358 = vmatprep.subr.bf16.mxu0 %v2669_v52 }
  0xd9   :  { %1943 = vmatmul.mubr.msk.f32.gmra.mrb[6].mxu1 %vm3023_vm10, %v2487_v51  ;;  %2114 = vmatmul.mubr.msk.f32.gmra.mrb[8].mxu0 %vm3057_vm3, %v2487_v51 }
  0xda   :  { %2260 = vmatpush3.bf16.msra.mxu1 %v2906_v6  ;;  %1945 = vmatprep.mubr.msk.f32.mxu1 %vm3040_vm15, %v2487_v51 }
  0xdb   :  { %2116 = vmatprep.mubr.msk.f32.mxu0 %vm3074_vm12, %v2487_v51  ;;  %2360 = vmatpush3.bf16.msra.mxu0 %v2669_v52 }
  0xdc   :  { %2262 = vmatprep.subr.bf16.mxu1 %v2908_v58  ;;  %2362 = vmatprep.subr.bf16.mxu0 %v2697_v60 }
  0xdd   :  { %1946 = vmatmul.mubr.msk.f32.gmra.mrb[8].mxu1 %vm3057_vm3, %v2487_v51  ;;  %2117 = vmatmul.mubr.msk.f32.gmra.mrb[10].mxu0 %vm3091_vm2, %v2487_v51 }
  0xde   :  { %2264 = vmatpush3.bf16.msra.mxu1 %v2908_v58  ;;  %1948 = vmatprep.mubr.msk.f32.mxu1 %vm3074_vm12, %v2487_v51 }
  0xdf   :  { %2119 = vmatprep.mubr.msk.f32.mxu0 %vm3399_vm0, %v2487_v51  ;;  %2364 = vmatpush3.bf16.msra.mxu0 %v2697_v60 }
  0xe0   :  { %2266 = vmatprep.subr.bf16.mxu1 %v2910_v1  ;;  %2366 = vmatprep.subr.bf16.mxu0 %v2725_v4 }
  0xe1   :  { %1949 = vmatmul.mubr.msk.f32.gmra.mrb[10].mxu1 %vm3091_vm2, %v2487_v51  ;;  %2120 = vmatmul.mubr.msk.f32.gmra.mrb[12].mxu0 %vm3400_vm7, %v2487_v51 }
  0xe2   :  { %2268 = vmatpush3.bf16.msra.mxu1 %v2910_v1  ;;  %1951 = vmatprep.mubr.msk.f32.mxu1 %vm3399_vm0, %v2487_v51 }
  0xe3   :  { %2122 = vmatprep.mubr.msk.f32.mxu0 %vm3132_vm13, %v2487_v51  ;;  %2368 = vmatpush3.bf16.msra.mxu0 %v2725_v4 }
  0xe4   :  { %2270 = vmatprep.subr.bf16.mxu1 %v2912_v2  ;;  %2370 = vmatprep.subr.bf16.mxu0 %v2755_v14 }
  0xe5   :  { %1952 = vmatmul.mubr.msk.f32.gmra.mrb[12].mxu1 %vm3400_vm7, %v2487_v51  ;;  %2123 = vmatmul.mubr.msk.f32.gmra.mrb[14].mxu0 %vm3145_vm9, %v2487_v51 }
  0xe6   :  { %2272 = vmatpush3.bf16.msra.mxu1 %v2912_v2  ;;  %1954 = vmatprep.mubr.msk.f32.mxu1 %vm3132_vm13, %v2487_v51 }
  0xe7   :  { %2372 = vmatpush3.bf16.msra.mxu0 %v2755_v14  ;;  %2157 = vmatprep.mubr.msk.f32.mxu0 %vm2929_vm5, %v2487_v51 }
  0xe8   :  { %2274 = vmatprep.subr.bf16.mxu1 %v2914_v7 }
  0xe9   :  { %1955 = vmatmul.mubr.msk.f32.gmra.mrb[14].mxu1 %vm3145_vm9, %v2487_v51 }
  0xea   :  { %2276 = vmatpush3.bf16.msra.mxu1 %v2914_v7  ;;  %2158 = vmatmul.mubr.msk.f32.vlgmr.msra.gmra.mrb[0].mxu0 %vm2922_vm4, %v2487_v51 }
  0xeb   :  { %1989 = vmatprep.mubr.f32.mxu1 %v2938_v48  ;;  %2160 = vmatprep.mubr.msk.f32.mxu0 %vm2942_vm8, %v2487_v51 }
  0xed   :  { %1990 = vmatmul.mubr.f32.vlgmr.msra.gmra.mrb[0].mxu1 %v2933_v27 }
  0xee   :  { %2161 = vmatmul.mubr.msk.f32.gmra.mrb[2].mxu0 %vm2957_vm11, %v2487_v51  ;;  %1992 = vmatprep.mubr.f32.mxu1 %v2951_v37 }
  0xef   :  { %2163 = vmatprep.mubr.msk.f32.mxu0 %vm2972_vm14, %v2487_v51 }
  0xf1   :  { %1993 = vmatmul.mubr.f32.gmra.mrb[2].mxu1 %v2966_v46 }
  0xf2   :  { %2164 = vmatmul.mubr.msk.f32.gmra.mrb[4].mxu0 %vm2989_vm1, %v2487_v51  ;;  %1995 = vmatprep.mubr.f32.mxu1 %v2982_v42 }
  0xf3   :  { %2166 = vmatprep.mubr.msk.f32.mxu0 %vm3006_vm6, %v2487_v51 }
  0xf5   :  { %1996 = vmatmul.mubr.f32.gmra.mrb[4].mxu1 %v2999_v16 }
  0xf6   :  { %2167 = vmatmul.mubr.msk.f32.gmra.mrb[6].mxu0 %vm3023_vm10, %v2487_v51  ;;  %1998 = vmatprep.mubr.f32.mxu1 %v3016_v20 }
  0xf7   :  { %2169 = vmatprep.mubr.msk.f32.mxu0 %vm3040_vm15, %v2487_v51 }
  0xf9   :  { %1999 = vmatmul.mubr.f32.gmra.mrb[6].mxu1 %v3033_v8 }
  0xfa   :  { %2170 = vmatmul.mubr.msk.f32.gmra.mrb[8].mxu0 %vm3057_vm3, %v2487_v51  ;;  %2001 = vmatprep.mubr.f32.mxu1 %v3050_v29 }
  0xfb   :  { %2172 = vmatprep.mubr.msk.f32.mxu0 %vm3074_vm12, %v2487_v51 }
  0xfd   :  { %2002 = vmatmul.mubr.f32.gmra.mrb[8].mxu1 %v3067_v17 }
  0xfe   :  { %2173 = vmatmul.mubr.msk.f32.gmra.mrb[10].mxu0 %vm3091_vm2, %v2487_v51  ;;  %2004 = vmatprep.mubr.f32.mxu1 %v3084_v39 }
  0xff   :  { %2175 = vmatprep.mubr.msk.f32.mxu0 %vm3399_vm0, %v2487_v51 }
 0x101   :  { %2005 = vmatmul.mubr.f32.gmra.mrb[10].mxu1 %v3100_v47 }
 0x102   :  { %2176 = vmatmul.mubr.msk.f32.gmra.mrb[12].mxu0 %vm3400_vm7, %v2487_v51  ;;  %2007 = vmatprep.mubr.f32.mxu1 %v3114_v54 }
 0x103   :  { %2178 = vmatprep.mubr.msk.f32.mxu0 %vm3132_vm13, %v2487_v51 }
 0x105   :  { %2008 = vmatmul.mubr.f32.gmra.mrb[12].mxu1 %v3127_v41 }
 0x106   :  { %2179 = vmatmul.mubr.msk.f32.gmra.mrb[14].mxu0 %vm3145_vm9, %v2487_v51  ;;  %2010 = vmatprep.mubr.f32.mxu1 %v3140_v10 }
 0x109   :  { %2011 = vmatmul.mubr.f32.gmra.mrb[14].mxu1 %v3153_v56 }
 0x1bd   :  { %v2159_v25 = vpop.f32.mrb[0].mxu0 }
 0x1be   :  { %v1447_v28 = vpop.f32.mrb[1].mxu0 }
 0x1c0   :  { %v1991_v36 = vpop.f32.mrb[0].mxu1 }
 0x1c1   :  { %v2373_v44 = vadd.f32 %v2159_v25, %v1991_v36  ;;  %v2162_v52 = vpop.f32.mrb[2].mxu0  ;;  %v837_v60 = vpop.f32.mrb[1].mxu1 }
 0x1c2   :  { %v2374_v4 = vadd.f32 %v1447_v28, %v837_v60  ;;  %v1459_v14 = vpop.f32.mrb[3].mxu0 }
 0x1c3   :  { %1542 = vst [vmem:[#allocation2 + $0x8] sm:$0xff] %v2373_v44 }
 0x1c4   :  { %1541 = vst [vmem:[#allocation2] sm:$0xff] %v2374_v4  ;;  %v1994_v63 = vpop.f32.mrb[2].mxu1 }
 0x1c5   :  { %v2375_v0 = vadd.f32 %v2162_v52, %v1994_v63  ;;  %v2165_v5 = vpop.f32.mrb[4].mxu0  ;;  %v851_v6 = vpop.f32.mrb[3].mxu1 }
 0x1c6   :  { %v2376_v58 = vadd.f32 %v1459_v14, %v851_v6  ;;  %v1471_v1 = vpop.f32.mrb[5].mxu0 }
 0x1c7   :  { %1544 = vst [vmem:[#allocation2 + $0x18] sm:$0xff] %v2375_v0 }
 0x1c8   :  { %1543 = vst [vmem:[#allocation2 + $0x10] sm:$0xff] %v2376_v58  ;;  %v1997_v2 = vpop.f32.mrb[4].mxu1 }
 0x1c9   :  { %v2377_v7 = vadd.f32 %v2165_v5, %v1997_v2  ;;  %v2168_v43 = vpop.f32.mrb[6].mxu0  ;;  %v865_v3 = vpop.f32.mrb[5].mxu1 }
 0x1ca   :  { %v2378_v38 = vadd.f32 %v1471_v1, %v865_v3  ;;  %v1483_v27 = vpop.f32.mrb[7].mxu0 }
 0x1cb   :  { %1546 = vst [vmem:[#allocation2 + $0x28] sm:$0xff] %v2377_v7 }
 0x1cc   :  { %1545 = vst [vmem:[#allocation2 + $0x20] sm:$0xff] %v2378_v38  ;;  %v2000_v48 = vpop.f32.mrb[6].mxu1 }
 0x1cd   :  { %v2379_v13 = vadd.f32 %v2168_v43, %v2000_v48  ;;  %v2171_v37 = vpop.f32.mrb[8].mxu0  ;;  %v879_v62 = vpop.f32.mrb[7].mxu1 }
 0x1ce   :  { %v2380_v46 = vadd.f32 %v1483_v27, %v879_v62  ;;  %v1495_v11 = vpop.f32.mrb[9].mxu0 }
 0x1cf   :  { %1548 = vst [vmem:[#allocation2 + $0x38] sm:$0xff] %v2379_v13 }
 0x1d0   :  { %1547 = vst [vmem:[#allocation2 + $0x30] sm:$0xff] %v2380_v46  ;;  %v2003_v42 = vpop.f32.mrb[8].mxu1 }
 0x1d1   :  { %v2381_v35 = vadd.f32 %v2171_v37, %v2003_v42  ;;  %v2174_v16 = vpop.f32.mrb[10].mxu0  ;;  %v893_v9 = vpop.f32.mrb[9].mxu1 }
 0x1d2   :  { %v2382_v20 = vadd.f32 %v1495_v11, %v893_v9  ;;  %v1507_v26 = vpop.f32.mrb[11].mxu0 }
 0x1d3   :  { %1550 = vst [vmem:[#allocation2 + $0x48] sm:$0xff] %v2381_v35 }
 0x1d4   :  { %1549 = vst [vmem:[#allocation2 + $0x40] sm:$0xff] %v2382_v20  ;;  %v2006_v8 = vpop.f32.mrb[10].mxu1 }
 0x1d5   :  { %v2383_v22 = vadd.f32 %v2174_v16, %v2006_v8  ;;  %v2177_v29 = vpop.f32.mrb[12].mxu0  ;;  %v907_v12 = vpop.f32.mrb[11].mxu1 }
 0x1d6   :  { %v2384_v17 = vadd.f32 %v1507_v26, %v907_v12  ;;  %v1519_v61 = vpop.f32.mrb[13].mxu0 }
 0x1d7   :  { %1552 = vst [vmem:[#allocation2 + $0x58] sm:$0xff] %v2383_v22 }
 0x1d8   :  { %1551 = vst [vmem:[#allocation2 + $0x50] sm:$0xff] %v2384_v17  ;;  %v2009_v39 = vpop.f32.mrb[12].mxu1 }
 0x1d9   :  { %v2385_v50 = vadd.f32 %v2177_v29, %v2009_v39  ;;  %v2180_v47 = vpop.f32.mrb[14].mxu0  ;;  %v921_v49 = vpop.f32.mrb[13].mxu1 }
 0x1da   :  { %v2386_v54 = vadd.f32 %v1519_v61, %v921_v49  ;;  %v1531_v55 = vpop.f32.mrb[15].mxu0 }
 0x1db   :  { %1554 = vst [vmem:[#allocation2 + $0x68] sm:$0xff] %v2385_v50 }
 0x1dc   :  { %1553 = vst [vmem:[#allocation2 + $0x60] sm:$0xff] %v2386_v54  ;;  %v2012_v41 = vpop.f32.mrb[14].mxu1 }
 0x1dd   :  { %v2387_v45 = vadd.f32 %v2180_v47, %v2012_v41  ;;  %v935_v18 = vpop.f32.mrb[15].mxu1 }
 0x1de   :  { %v2388_v19 = vadd.f32 %v1531_v55, %v935_v18 }
 0x1df   :  { %1556 = vst [vmem:[#allocation2 + $0x78] sm:$0xff] %v2387_v45 }
 0x1e0   :  { %1555 = vst [vmem:[#allocation2 + $0x70] sm:$0xff] %v2388_v19 }
 0x1e1   :  { %2472 = shalt.err (!%p2469_p4)
}
 0x1e2   :  { %s2473_s24 = scalar_lea.hbm %s3362_s2, 2048 }
 0x1e3   :  { %p2474_p5 = scmp.ne.s32.totalorder %s3362_s2, %s2473_s24  ;;  %p2477_p6 = scmp.lt.u32.totalorder %s2473_s24, %s3362_s2 }
 0x1e5   :  { %p2479_p7 = pnand %p2477_p6, %p2474_p5 }
 0x1e7   :  { %2482 = shalt.err (!%p2479_p7)
}
 0x1e8   :  { %s2489_s28 = smov 128   ;;  %s2490_s29 = smov 8  }
 0x1e9   :  { %1568 = dma.vmem_to_hbm [thread:$0]  %s1563_s20, 2048, %s3362_s2, [#allocation3], %s2489_s28, %s2489_s28, %s2490_s29  }
 0x1ea   :  { %2483 = dma.done.wait [#allocation3], 2048  }
 0x1eb   :  { %2484 = vsyncadd [#allocation3], 4294965248 }
 0x1ec   :  { %1572 = vsyncpa [#allocation3], 1 }

</bundles_post_ra>
